<compile_context>
chip_gen: v5e
topology: v5e:2x2
jax: 0.10.0
libtpu: 0.0.40
codegen_flags: <defaults>
</compile_context>

<pallas_src>
import functools

import jax
import jax.numpy as jnp
from jax.experimental import pallas as pl
from jax.experimental.pallas import tpu as pltpu


def _affine_softmax_kernel(x_ref, w_ref, o_ref, *, n_in):
    """Fused (fc2 ∘ drop ∘ fc1) affine map on the VPU, then softmax over dim=0.

    x_ref: (B, n_in)             f32
    w_ref: (n_in + 1, n_out_pad) f32  rows 0..n_in-1 = W_eff = W1^T @ W2^T,
                                      row n_in      = b_eff = b1 @ W2^T + b2
                                      (padded columns are 0)
    o_ref: (B, n_out_pad)        f32  softmax over dim=0 (batch axis)
    """
    x = x_ref[...]

    # Fused affine layer: K = n_in = 2 -> two broadcast FMAs on already-loaded vregs.
    # No MXU pass: a padded 128x128 vmatmul here would be <1% utilized and its
    # push/result-drain latency is serial (nothing to overlap it with).
    logits = w_ref[n_in:n_in + 1, :]                # bias row, broadcasts over batch
    for k in range(n_in):                           # n_in static & tiny -> unrolled at trace time
        logits = logits + x[:, k:k + 1] * w_ref[k:k + 1, :]

    # Dropout(p=0.1): identity in eval mode (pre-composition is only valid because of this).
    # TODO(synk): training-mode dropout would require restoring the two-stage form and a
    # pltpu.prng_seed/prng_random_bits mask scaled by 1/(1-p); forward here matches eval().

    # Softmax over dim=0 (batch axis), matching F.softmax(out, dim=0).
    logits = logits - jnp.max(logits, axis=0, keepdims=True)
    e = jnp.exp(logits)
    denom = jnp.sum(e, axis=0, keepdims=True)
    # EUP approximate reciprocal (separate VLIW slot) + one Newton-Raphson refinement
    # to recover full f32 accuracy — no vector divide.
    r = pl.reciprocal(denom, approx=True)
    r = r * (2.0 - denom * r)
    o_ref[...] = (e * r).astype(o_ref.dtype)


def pack_params(w1, b1, w2, b2):
    """One-time, weight-load-time packing.

    Pre-composes fc1 and fc2 (valid: no activation in between, dropout is eval-identity)
    and folds the fused bias into the slab as an extra row, padded to 128 lanes so the
    kernel's output store is a full unmasked vst.

    w1: (n_in, n_hidden), b1: (n_hidden,), w2: (n_hidden, n_out), b2: (n_out,)
    Returns packed slab of shape (n_in + 1, n_out_pad), and n_out.
    """
    n_in = w1.shape[0]
    n_out = w2.shape[1]
    n_out_pad = max(128, ((n_out + 127) // 128) * 128)

    w_eff = w1 @ w2                     # (n_in, n_out)
    b_eff = b1 @ w2 + b2                # (n_out,)

    packed = jnp.zeros((n_in + 1, n_out_pad), jnp.float32)
    packed = packed.at[:n_in, :n_out].set(w_eff)
    packed = packed.at[n_in, :n_out].set(b_eff)
    return packed, n_out


def _forward_padded(x, packed):
    """Returns the lane-dense (B, n_out_pad) softmax slab (padded cols hold softmax of
    all-zero logits = 1/B; slice or ignore them)."""
    B, n_in = x.shape
    n_out_pad = packed.shape[1]

    vmem = pl.BlockSpec(memory_space=pltpu.MemorySpace.VMEM)
    cost = pl.CostEstimate(
        flops=2 * B * n_in * n_out_pad,                 # fused affine FMAs
        transcendentals=B * n_out_pad + n_out_pad,      # exp + reciprocal
        bytes_accessed=4 * (x.size + packed.size + B * n_out_pad),
    )

    # Grid-less, single TensorCore on purpose: the whole problem is ~1 output vreg and the
    # dim=0 softmax couples the batch, so any grid/megacore split only adds overhead.
    return pl.pallas_call(
        functools.partial(_affine_softmax_kernel, n_in=n_in),
        out_shape=jax.ShapeDtypeStruct((B, n_out_pad), jnp.float32),
        in_specs=[vmem, vmem],
        out_specs=vmem,
        cost_estimate=cost,
    )(x, packed)


@functools.partial(jax.jit, static_argnames=("n_out",))
def linear_forward(x, packed, *, n_out):
    """x: (B, n_input) f32, packed: output of pack_params. Returns (B, n_out) f32,
    softmaxed over axis 0 (batch), matching the PyTorch module. The slice is fused under
    this jit; callers that can consume the padded slab should use _forward_padded."""
    return _forward_padded(x, packed)[:, :n_out]


def init_params(key, n_input, n_hidden, n_output):
    """Deterministic init mimicking torch.nn.Linear's U(-1/sqrt(fan_in), 1/sqrt(fan_in))."""
    k1, k2, k3, k4 = jax.random.split(key, 4)
    bound1 = 1.0 / jnp.sqrt(n_input)
    bound2 = 1.0 / jnp.sqrt(n_hidden)
    # stored pre-transposed: (in_features, out_features)
    w1 = jax.random.uniform(k1, (n_input, n_hidden), jnp.float32, -bound1, bound1)
    b1 = jax.random.uniform(k2, (n_hidden,), jnp.float32, -bound1, bound1)
    w2 = jax.random.uniform(k3, (n_hidden, n_output), jnp.float32, -bound2, bound2)
    b2 = jax.random.uniform(k4, (n_output,), jnp.float32, -bound2, bound2)
    return w1, b1, w2, b2


def _reference(x, w1, b1, w2, b2):
    hidden = x @ w1 + b1            # dropout is identity in eval mode
    out = hidden @ w2 + b2
    return jax.nn.softmax(out, axis=0)


if __name__ == "__main__":
    # valence/arousal scores -> emotion logits: n_input=2, n_output=7, n_hidden=32
    batch, n_input, n_hidden, n_output = 8, 2, 32, 7

    key = jax.random.PRNGKey(0)
    kx, kp = jax.random.split(key)
    x = jax.random.normal(kx, (batch, n_input), dtype=jnp.float32)
    w1, b1, w2, b2 = init_params(kp, n_input, n_hidden, n_output)

    # One-time packing (weight-load-time cost); only the pre-packed slab enters the hot path.
    packed, n_out = pack_params(w1, b1, w2, b2)
    packed = jax.block_until_ready(packed)

    out = linear_forward(x, packed, n_out=n_out)
    out = jax.block_until_ready(out)

    # sanity 1: shape + softmax over dim=0 -> each column sums to 1
    col_sums = jnp.sum(out, axis=0)
    assert out.shape == (batch, n_output)
    assert jnp.allclose(col_sums, jnp.ones_like(col_sums), atol=1e-4), col_sums

    # sanity 2: matches a pure-JAX reference of the PyTorch forward (two-stage, unfused)
    ref = _reference(x, w1, b1, w2, b2)
    assert jnp.allclose(out, ref, rtol=1e-4, atol=1e-5), jnp.max(jnp.abs(out - ref))

    print("KERNEL_OK")
</pallas_src>

<mosaic_0001>
module attributes {stable_mosaic.version = 11 : i64} {
  func.func @_affine_softmax_kernel(%arg0: memref<8x2xf32, #tpu.memory_space<vmem>>, %arg1: memref<3x128xf32, #tpu.memory_space<vmem>>, %arg2: memref<8x128xf32, #tpu.memory_space<vmem>>) attributes {dimension_semantics = [], scalar_prefetch = 0 : i64, scratch_operands = 0 : i64, tpu.core_type = #tpu.core_type<tc>} {
    %c0 = arith.constant 0 : index
    %c0_0 = arith.constant 0 : index
    %0 = vector.load %arg0[%c0, %c0_0] : memref<8x2xf32, #tpu.memory_space<vmem>>, vector<8x2xf32>
    %c2 = arith.constant 2 : index
    %c0_1 = arith.constant 0 : index
    %1 = vector.load %arg1[%c2, %c0_1] : memref<3x128xf32, #tpu.memory_space<vmem>>, vector<1x128xf32>
    %2 = vector.extract_strided_slice %0 {offsets = [0, 0], sizes = [8, 1], strides = [1, 1]} : vector<8x2xf32> to vector<8x1xf32>
    %c0_2 = arith.constant 0 : index
    %c0_3 = arith.constant 0 : index
    %3 = vector.load %arg1[%c0_2, %c0_3] : memref<3x128xf32, #tpu.memory_space<vmem>>, vector<1x128xf32>
    %4 = vector.broadcast %2 : vector<8x1xf32> to vector<8x128xf32>
    %5 = vector.broadcast %3 : vector<1x128xf32> to vector<8x128xf32>
    %6 = arith.mulf %4, %5 : vector<8x128xf32>
    %7 = vector.broadcast %1 : vector<1x128xf32> to vector<8x128xf32>
    %8 = arith.addf %7, %6 : vector<8x128xf32>
    %9 = vector.extract_strided_slice %0 {offsets = [0, 1], sizes = [8, 1], strides = [1, 1]} : vector<8x2xf32> to vector<8x1xf32>
    %c1 = arith.constant 1 : index
    %c0_4 = arith.constant 0 : index
    %10 = vector.load %arg1[%c1, %c0_4] : memref<3x128xf32, #tpu.memory_space<vmem>>, vector<1x128xf32>
    %11 = vector.broadcast %9 : vector<8x1xf32> to vector<8x128xf32>
    %12 = vector.broadcast %10 : vector<1x128xf32> to vector<8x128xf32>
    %13 = arith.mulf %11, %12 : vector<8x128xf32>
    %14 = arith.addf %8, %13 : vector<8x128xf32>
    %cst = arith.constant dense<0xFF800000> : vector<128xf32>
    %15 = vector.multi_reduction <maximumf>, %14, %cst [0] : vector<8x128xf32> to vector<128xf32>
    %16 = vector.shape_cast %15 : vector<128xf32> to vector<1x128xf32>
    %17 = vector.broadcast %16 : vector<1x128xf32> to vector<8x128xf32>
    %18 = arith.subf %14, %17 : vector<8x128xf32>
    %19 = math.exp %18 : vector<8x128xf32>
    %cst_5 = arith.constant dense<0.000000e+00> : vector<128xf32>
    %20 = vector.multi_reduction <add>, %19, %cst_5 [0] : vector<8x128xf32> to vector<128xf32>
    %21 = vector.shape_cast %20 : vector<128xf32> to vector<1x128xf32>
    %22 = tpu.reciprocal %21 {approx = true} : vector<1x128xf32> -> vector<1x128xf32>
    %23 = arith.mulf %21, %22 : vector<1x128xf32>
    %cst_6 = arith.constant 2.000000e+00 : f32
    %24 = vector.broadcast %cst_6 : f32 to vector<1x128xf32>
    %25 = arith.subf %24, %23 : vector<1x128xf32>
    %26 = arith.mulf %22, %25 : vector<1x128xf32>
    %27 = vector.broadcast %26 : vector<1x128xf32> to vector<8x128xf32>
    %28 = arith.mulf %19, %27 : vector<8x128xf32>
    %c0_7 = arith.constant 0 : index
    %c0_8 = arith.constant 0 : index
    %29 = vector.load %arg2[%c0_7, %c0_8] : memref<8x128xf32, #tpu.memory_space<vmem>>, vector<8x128xf32>
    tpu.vector_store %arg2[%c0_7, %c0_8], %28 {strides = array<i32>} : memref<8x128xf32, #tpu.memory_space<vmem>>, vector<8x128xf32>,
    return
  }
}

</mosaic_0001>

<bundles_post_ra>
// kernel: linear_forward.1
= control target key start
LH: loop header
LB: loop body
LE: loop exit
PB: predicated region body
PF: predicated region fallthrough
CT: control target
= control target key end

     0   :  { %v107_v1 = vmov 0   ;;  %s140_s0 = inlined_call_operand.vmem [shape: f32[8,2], index: 0, kind: input, shape index: {}]   ;;  %s141_s1 = inlined_call_operand.vmem [shape: f32[3,128], index: 1, kind: input, shape index: {}]   ;;  %s142_s2 = inlined_call_operand.hbm [shape: f32[8,128], index: 2, kind: output, shape index: {}]  }
   0x1   :  { %v12_v0 = vld [vmem:[%s140_s0] sm:$0xff]  ;;  %72 = vset.pattern.permute.xlu0 %v107_v1 }
   0x2   :  { %17 = vperm.xlu0 %72, %v12_v0  }
   0x3   :  { %7 = vsyncpa [#allocation3], 0  ;;  %v108_v2 = vmov 1   ;;  %v74_v4 = vld [vmem:[%s141_s1] ss:$0 sm:$0xff]  ;;  %s109_s0 = smov [#allocation2]  }
   0x4   :  { %v75_v5 = vld [vmem:[%s141_s1 + $0x2] ss:$0 sm:$0xff]  ;;  %v76_v7 = vld [vmem:[%s141_s1 + $0x1] ss:$0 sm:$0xff]  ;;  %s58_s1 = sshll.u32 %s109_s0, 4  ;;  %s60_s19 = sshll.u32 %s142_s2, 4  ;;  %s59_s1 = int_to_ptr.vmem [resolvable:$true] %s58_s1  ;;  %s61_s19 = int_to_ptr.hbm [resolvable:$true] %s60_s19 }
   0xa   :  { %73 = vset.pattern.permute.xlu0 %v108_v2 }
   0xb   :  { %26 = vperm.xlu0 %73, %v12_v0  }
  0x74   :  { %v18_v3 = vpop.permute.xlu0 %17 }
  0x75   :  { %v21_v6 = vmul.f32 %v74_v4, %v18_v3 }
  0x77   :  { %v23_v9 = vadd.f32 %v75_v5, %v21_v6 }
  0x7d   :  { %v27_v8 = vpop.permute.xlu0 %26 }
  0x7e   :  { %v30_v10 = vmul.f32 %v76_v7, %v27_v8 }
  0x80   :  { %v31_v11 = vadd.f32 %v30_v10, %v23_v9 }
  0x82   :  { %v32_v12 = vrot.slane %v31_v11, 4 }
  0x84   :  { %v33_v13 = vmax.f32 %v31_v11, %v32_v12 }
  0x86   :  { %v34_v14 = vrot.slane %v33_v13, 2 }
  0x88   :  { %v35_v15 = vmax.f32 %v33_v13, %v34_v14 }
  0x8a   :  { %v36_v16 = vrot.slane %v35_v15, 1 }
  0x8c   :  { %v37_v17 = vmax.f32 %v35_v15, %v36_v16 }
  0x8e   :  { %v38_v18 = vsub.f32 %v31_v11, %v37_v17 }
  0x90   :  { %v39_v19 = vmul.f32 1.442695, %v38_v18 }
  0x92   :  { %77 = vpow2.f32 %v39_v19 }
  0x98   :  { %v78_v20 = vpop.eup %77 }
  0x99   :  { %v41_v21 = vrot.slane %v78_v20, 4 }
  0x9b   :  { %v42_v22 = vadd.f32 %v78_v20, %v41_v21 }
  0x9d   :  { %v43_v23 = vrot.slane %v42_v22, 2 }
  0x9f   :  { %v44_v24 = vadd.f32 %v43_v23, %v42_v22 }
  0xa1   :  { %v45_v25 = vrot.slane %v44_v24, 1 }
  0xa3   :  { %v46_v26 = vadd.f32 %v45_v25, %v44_v24 }
  0xa5   :  { %79 = vrcp.f32 %v46_v26 }
  0xab   :  { %v80_v27 = vpop.eup %79 }
  0xac   :  { %v48_v28 = vmul.f32 %v80_v27, %v46_v26 }
  0xae   :  { %v49_v29 = vsub.f32 2.0, %v48_v28 }
  0xb0   :  { %v50_v30 = vmul.f32 %v80_v27, %v49_v29 }
  0xb2   :  { %v51_v31 = vmul.f32 %v78_v20, %v50_v30 }
  0xb4   :  { %52 = vst [vmem:[#allocation2] sm:$0xff] %v51_v31 }
  0xb5   :  { %63 = dma.vmem_to_hbm [thread:$0]  %s59_s1, 128, %s61_s19, [#allocation3]  }
  0xb6   :  { %105 = dma.done.wait [#allocation3], 128  }
  0xb7   :  { %106 = vsyncadd [#allocation3], 4294967168 }
  0xb8   :  { %68 = vsyncpa [#allocation3], 1 }

</bundles_post_ra>
